<compile_context>
chip_gen: v6e
topology: v6e:2x2x1
jax: 0.10.0
libtpu: 0.0.40
codegen_flags: <defaults>
</compile_context>

<pallas_src>
from functools import partial

import jax
import jax.numpy as jnp
from jax.experimental import pallas as pl
from jax.experimental.pallas import tpu as pltpu

EPS = 1e-5


# ---------------------------------------------------------------------------
# Kernel
# ---------------------------------------------------------------------------
def dense_block_kernel(x_ref, w_ref, p_ref, o_ref):
    # x_ref: (B, dim_in)     bf16  -- VMEM-resident across the feature grid
    # w_ref: (dim_in, Tn)    bf16  -- Linear weight tile (pre-transposed, bf16)
    # p_ref: (3, Tn)         f32   -- rows = [bias, gamma, beta]
    # o_ref: (B, Tn)         f32/bf16
    # ---- Linear: bf16 MXU inputs, f32 accumulation ----
    y = jnp.dot(x_ref[...], w_ref[...], preferred_element_type=jnp.float32)
    y = y + p_ref[0:1, :]
    # ---- ReLU (VPU, f32) ----
    y = jnp.maximum(y, 0.0)
    # ---- BatchNorm1d, training-mode stats over the full batch -------------
    # Two-pass (centered) variance: avoids E[y^2]-E[y]^2 cancellation on the
    # non-negative post-ReLU activations.  Reductions -> XLU, rsqrt -> EUP,
    # both free VLIW slots next to the VPU work.
    inv_n = 1.0 / y.shape[0]
    mean = jnp.sum(y, axis=0, keepdims=True) * inv_n
    c = y - mean
    var = jnp.sum(c * c, axis=0, keepdims=True) * inv_n          # biased variance
    scale = p_ref[1:2, :] * jax.lax.rsqrt(var + EPS)
    o_ref[...] = (c * scale + p_ref[2:3, :]).astype(o_ref.dtype)


# ---------------------------------------------------------------------------
# Footprint / tiling helpers (single source of truth for VMEM math)
# ---------------------------------------------------------------------------
def _vmem_bytes(B, dim_in, tile_n, *, x_buffers, w_buffers, out_itemsize):
    b_pad = max(B, 8)                                # sublane padding
    x_bytes = x_buffers * b_pad * dim_in * 2         # bf16 resident x
    w_bytes = w_buffers * dim_in * tile_n * 2        # bf16 W tiles
    p_bytes = 2 * 8 * tile_n * 4                     # (3,Tn) f32, padded to 8 sublanes, 2-buf
    o_bytes = 2 * b_pad * tile_n * out_itemsize      # output tiles, 2-buf
    tmp = 3 * b_pad * tile_n * 4                     # y / centered / result temporaries
    return x_bytes + w_bytes + p_bytes + o_bytes + tmp


def _device_info():
    """(physical VMEM bytes per core, has-2-TensorCores?) with safe fallbacks."""
    try:
        info = pltpu.get_tpu_info()
        vmem_cap = int(getattr(info, "vmem_capacity_bytes", 64 * 1024 * 1024))
    except Exception:
        vmem_cap = 64 * 1024 * 1024                  # conservative (v7x-sized)
    try:
        kind = jax.devices()[0].device_kind.lower()
    except Exception:
        kind = ""
    return vmem_cap, ("v7" in kind)


def _pick_tiling(B, dim_in, dim_out_p, budget, two_cores, out_itemsize):
    """Largest lane-dense dim_out tile fitting the budget; on 2-TC chips prefer
    an even grid of >= 4 steps; W-stream buffer depth capped by grid length."""
    cands = [t for t in (2048, 1024, 512, 256, 128) if dim_out_p % t == 0]
    fits = [t for t in cands
            if _vmem_bytes(B, dim_in, t, x_buffers=1, w_buffers=2,
                           out_itemsize=out_itemsize) <= budget]
    if not fits:
        fits = [cands[-1]]                           # smallest candidate (128)
    tile_n = fits[0]
    if two_cores:
        for t in fits:                               # balance across 2 TensorCores
            g = dim_out_p // t
            if g >= 4 and g % 2 == 0:
                tile_n = t
                break
    grid_len = dim_out_p // tile_n
    w_depth = 3 if _vmem_bytes(B, dim_in, tile_n, x_buffers=1, w_buffers=3,
                               out_itemsize=out_itemsize) <= budget else 2
    w_depth = max(1, min(w_depth, grid_len))         # never deeper than the grid
    return tile_n, w_depth


# ---------------------------------------------------------------------------
# One-time parameter preparation (keep OUTSIDE the per-step jitted call)
# ---------------------------------------------------------------------------
def prepare_params(w, b, gamma, beta):
    """Transpose + cast the Linear weight to a lane-dense bf16 (dim_in, dim_out_p)
    slab and pack [bias; gamma; beta] into one (3, dim_out_p) f32 array, padding
    dim_out up to a multiple of 128.  Returns (w_t_bf16, params, dim_out)."""
    dim_out, dim_in = w.shape
    dim_out_p = ((dim_out + 127) // 128) * 128
    pad = dim_out_p - dim_out
    w_t = jnp.asarray(w, jnp.float32).T.astype(jnp.bfloat16)     # (dim_in, dim_out)
    params = jnp.stack([jnp.asarray(b, jnp.float32),
                        jnp.asarray(gamma, jnp.float32),
                        jnp.asarray(beta, jnp.float32)])          # (3, dim_out)
    if pad:
        w_t = jnp.pad(w_t, ((0, 0), (0, pad)))
        params = jnp.pad(params, ((0, 0), (0, pad)))
    return w_t, params, dim_out


# ---------------------------------------------------------------------------
# Jitted forward
# ---------------------------------------------------------------------------
@partial(jax.jit, static_argnames=("dim_out", "out_dtype"))
def dense_block(x, w_t, params, *, dim_out, out_dtype=jnp.float32):
    """x: (B, dim_in) f32; w_t: (dim_in, dim_out_p) bf16 (from prepare_params);
    params: (3, dim_out_p) f32 = [bias, gamma, beta].  Returns (B, dim_out)."""
    B, dim_in = x.shape
    dim_out_p = w_t.shape[1]
    out_itemsize = jnp.dtype(out_dtype).itemsize

    vmem_cap, two_cores = _device_info()
    budget = int(vmem_cap * 0.70)                    # ~45 MiB v7x, ~90 MiB v5e/v6e
    tile_n, w_depth = _pick_tiling(B, dim_in, dim_out_p, budget, two_cores,
                                   out_itemsize)
    grid = (dim_out_p // tile_n,)

    footprint = _vmem_bytes(B, dim_in, tile_n, x_buffers=1, w_buffers=w_depth,
                            out_itemsize=out_itemsize)
    vmem_limit = int(min(max(footprint + (4 << 20), 16 << 20), vmem_cap * 0.75))

    x_bf = x.astype(jnp.bfloat16)                    # cheap: B*dim_in elements

    cost = pl.CostEstimate(
        flops=2 * B * dim_in * dim_out_p + 10 * B * dim_out_p,
        transcendentals=dim_out_p,                   # rsqrt per feature
        bytes_accessed=(B * dim_in * 2 + dim_in * dim_out_p * 2
                        + 3 * dim_out_p * 4 + B * dim_out_p * out_itemsize),
    )

    out = pl.pallas_call(
        dense_block_kernel,
        out_shape=jax.ShapeDtypeStruct((B, dim_out_p), out_dtype),
        grid_spec=pltpu.PrefetchScalarGridSpec(
            num_scalar_prefetch=0,
            grid=grid,
            in_specs=[
                # x: VMEM-resident, constant block index -> single buffer.
                pl.BlockSpec((B, dim_in), lambda j: (0, 0),
                             pipeline_mode=pl.Buffered(1)),
                # W tile: the dominant HBM stream -> deeper buffering.
                pl.BlockSpec((dim_in, tile_n), lambda j: (0, j),
                             pipeline_mode=pl.Buffered(w_depth)),
                # packed [bias, gamma, beta] tile.
                pl.BlockSpec((3, tile_n), lambda j: (0, j)),
            ],
            out_specs=pl.BlockSpec((B, tile_n), lambda j: (0, j)),
        ),
        compiler_params=pltpu.CompilerParams(
            dimension_semantics=("parallel",),
            vmem_limit_bytes=vmem_limit,
        ),
        cost_estimate=cost,
    )(x_bf, w_t, params)

    if dim_out_p != dim_out:
        out = out[:, :dim_out]
    return out


# ---------------------------------------------------------------------------
# Pure-JAX reference (same numerics contract: bf16-rounded matmul inputs,
# f32 math, biased two-pass variance -> training-mode BatchNorm1d).
# ---------------------------------------------------------------------------
def reference(x, w, b, gamma, beta):
    xb = x.astype(jnp.bfloat16).astype(jnp.float32)
    wb = w.astype(jnp.bfloat16).astype(jnp.float32)
    y = jnp.maximum(xb @ wb.T + b.reshape(1, -1), 0.0)
    mean = jnp.mean(y, axis=0, keepdims=True)
    var = jnp.mean((y - mean) ** 2, axis=0, keepdims=True)
    return ((y - mean) * jax.lax.rsqrt(var + EPS) * gamma.reshape(1, -1)
            + beta.reshape(1, -1))


if __name__ == "__main__":
    # Small shapes consistent with the module; dim_out=1024 exercises a
    # multi-step feature grid while staying tiny.
    B, dim_in, dim_out = 8, 32, 1024

    key = jax.random.PRNGKey(0)
    k_x, k_w, k_b = jax.random.split(key, 3)

    # Mirrors DenseBlock.__init__:
    #   Linear.weight (dim_out, dim_in), kaiming_normal_(nonlinearity='relu')
    #   Linear.bias   (dim_out,), U(-1/sqrt(fan_in), 1/sqrt(fan_in))
    #   BatchNorm1d   gamma=1, beta=0
    w = jax.random.normal(k_w, (dim_out, dim_in), jnp.float32) * jnp.sqrt(2.0 / dim_in)
    bound = 1.0 / jnp.sqrt(jnp.float32(dim_in))
    b = jax.random.uniform(k_b, (dim_out,), jnp.float32, -bound, bound)
    gamma = jnp.ones((dim_out,), jnp.float32)
    beta = jnp.zeros((dim_out,), jnp.float32)

    x = jax.random.normal(k_x, (B, dim_in), jnp.float32)

    # One-time parameter prep (outside the jitted hot path, cacheable).
    w_t, params, d_out = prepare_params(w, b, gamma, beta)

    out = dense_block(x, w_t, params, dim_out=d_out)
    out = jax.block_until_ready(out)

    ref = reference(x, w, b, gamma, beta)
    assert out.shape == (B, dim_out), out.shape
    max_err = float(jnp.max(jnp.abs(out - ref)))
    assert jnp.allclose(out, ref, atol=2e-3, rtol=2e-3), max_err

    print("KERNEL_OK")
</pallas_src>

<mosaic_0001>
module attributes {stable_mosaic.version = 11 : i64} {
  func.func @dense_block_kernel(%arg0: i32, %arg1: memref<8x32xbf16, #tpu.memory_space<vmem>>, %arg2: memref<32x1024xbf16, #tpu.memory_space<vmem>>, %arg3: memref<3x1024xf32, #tpu.memory_space<vmem>>, %arg4: memref<8x1024xf32, #tpu.memory_space<vmem>>) attributes {dimension_semantics = [#tpu.dimension_semantics<parallel>], iteration_bounds = array<i64: 1>, scalar_prefetch = 0 : i64, scratch_operands = 0 : i64, tpu.core_type = #tpu.core_type<tc>, window_params = [{pipeline_mode = #tpu.pipeline_mode<synchronous>, transform_indices = @transform_0, window_bounds = array<i64: 8, 32>}, {pipeline_mode = #tpu.pipeline_mode<synchronous>, transform_indices = @transform_1, window_bounds = array<i64: 32, 1024>}, {transform_indices = @transform_2, window_bounds = array<i64: 3, 1024>}, {transform_indices = @transform_3, window_bounds = array<i64: 8, 1024>}]} {
    %c0 = arith.constant 0 : index
    %c0_0 = arith.constant 0 : index
    %0 = vector.load %arg1[%c0, %c0_0] : memref<8x32xbf16, #tpu.memory_space<vmem>>, vector<8x32xbf16>
    %c0_1 = arith.constant 0 : index
    %c0_2 = arith.constant 0 : index
    %1 = vector.load %arg2[%c0_1, %c0_2] : memref<32x1024xbf16, #tpu.memory_space<vmem>>, vector<32x1024xbf16>
    %cst = arith.constant dense<0.000000e+00> : vector<8x1024xf32>
    %2 = tpu.matmul %0, %1, %cst {dimension_numbers = #tpu.dot_dimension_numbers<[1], [0], [0], [1], [0, 0, 1, 1], [], []>} : vector<8x32xbf16>, vector<32x1024xbf16>, vector<8x1024xf32> -> vector<8x1024xf32>
    %c0_3 = arith.constant 0 : index
    %c0_4 = arith.constant 0 : index
    %3 = vector.load %arg3[%c0_3, %c0_4] : memref<3x1024xf32, #tpu.memory_space<vmem>>, vector<1x1024xf32>
    %4 = vector.broadcast %3 : vector<1x1024xf32> to vector<8x1024xf32>
    %5 = arith.addf %2, %4 : vector<8x1024xf32>
    %cst_5 = arith.constant 0.000000e+00 : f32
    %6 = vector.broadcast %cst_5 : f32 to vector<8x1024xf32>
    %7 = arith.maximumf %5, %6 : vector<8x1024xf32>
    %cst_6 = arith.constant dense<0.000000e+00> : vector<1024xf32>
    %8 = vector.multi_reduction <add>, %7, %cst_6 [0] : vector<8x1024xf32> to vector<1024xf32>
    %9 = vector.shape_cast %8 : vector<1024xf32> to vector<1x1024xf32>
    %cst_7 = arith.constant 1.250000e-01 : f32
    %10 = vector.broadcast %cst_7 : f32 to vector<1x1024xf32>
    %11 = arith.mulf %9, %10 : vector<1x1024xf32>
    %12 = vector.broadcast %11 : vector<1x1024xf32> to vector<8x1024xf32>
    %13 = arith.subf %7, %12 : vector<8x1024xf32>
    %14 = arith.mulf %13, %13 : vector<8x1024xf32>
    %cst_8 = arith.constant dense<0.000000e+00> : vector<1024xf32>
    %15 = vector.multi_reduction <add>, %14, %cst_8 [0] : vector<8x1024xf32> to vector<1024xf32>
    %16 = vector.shape_cast %15 : vector<1024xf32> to vector<1x1024xf32>
    %cst_9 = arith.constant 1.250000e-01 : f32
    %17 = vector.broadcast %cst_9 : f32 to vector<1x1024xf32>
    %18 = arith.mulf %16, %17 : vector<1x1024xf32>
    %c1 = arith.constant 1 : index
    %c0_10 = arith.constant 0 : index
    %19 = vector.load %arg3[%c1, %c0_10] : memref<3x1024xf32, #tpu.memory_space<vmem>>, vector<1x1024xf32>
    %cst_11 = arith.constant 9.99999974E-6 : f32
    %20 = vector.broadcast %cst_11 : f32 to vector<1x1024xf32>
    %21 = arith.addf %18, %20 : vector<1x1024xf32>
    %22 = math.rsqrt %21 : vector<1x1024xf32>
    %23 = arith.mulf %19, %22 : vector<1x1024xf32>
    %24 = vector.broadcast %23 : vector<1x1024xf32> to vector<8x1024xf32>
    %25 = arith.mulf %13, %24 : vector<8x1024xf32>
    %c2 = arith.constant 2 : index
    %c0_12 = arith.constant 0 : index
    %26 = vector.load %arg3[%c2, %c0_12] : memref<3x1024xf32, #tpu.memory_space<vmem>>, vector<1x1024xf32>
    %27 = vector.broadcast %26 : vector<1x1024xf32> to vector<8x1024xf32>
    %28 = arith.addf %25, %27 : vector<8x1024xf32>
    %c0_13 = arith.constant 0 : index
    %c0_14 = arith.constant 0 : index
    %29 = vector.load %arg4[%c0_13, %c0_14] : memref<8x1024xf32, #tpu.memory_space<vmem>>, vector<8x1024xf32>
    tpu.vector_store %arg4[%c0_13, %c0_14], %28 {strides = array<i32>} : memref<8x1024xf32, #tpu.memory_space<vmem>>, vector<8x1024xf32>,
    return
  }
  func.func @transform_0(%arg0: i32) -> (i32, i32) {
    %c0_i32 = arith.constant 0 : i32
    %c0_i32_0 = arith.constant 0 : i32
    %c0_i32_1 = arith.constant 0 : i32
    return %c0_i32, %c0_i32_0 : i32, i32
  }
  func.func @transform_1(%arg0: i32) -> (i32, i32) {
    %c0_i32 = arith.constant 0 : i32
    %c0_i32_0 = arith.constant 0 : i32
    return %c0_i32, %arg0 : i32, i32
  }
  func.func @transform_2(%arg0: i32) -> (i32, i32) {
    %c0_i32 = arith.constant 0 : i32
    %c0_i32_0 = arith.constant 0 : i32
    return %c0_i32, %arg0 : i32, i32
  }
  func.func @transform_3(%arg0: i32) -> (i32, i32) {
    %c0_i32 = arith.constant 0 : i32
    %c0_i32_0 = arith.constant 0 : i32
    return %c0_i32, %arg0 : i32, i32
  }
}

</mosaic_0001>

<bundles_post_ra>
// kernel: dense_block.1
= control target key start
LH: loop header
LB: loop body
LE: loop exit
PB: predicated region body
PF: predicated region fallthrough
CT: control target
= control target key end

     0   :  { %8 = vsyncpa [#allocation3], 0  ;;  %s969_s0 = inlined_call_operand.vmem [shape: bf16[8,32], index: 0, kind: input, shape index: {}]   ;;  %s970_s1 = inlined_call_operand.hbm [shape: bf16[32,1024], index: 1, kind: input, shape index: {}]   ;;  %s971_s2 = inlined_call_operand.hbm [shape: f32[3,1024], index: 2, kind: input, shape index: {}]   ;;  %s972_s3 = inlined_call_operand.hbm [shape: f32[8,1024], index: 3, kind: output, shape index: {}]  }
   0x1   :  { %9 = vsyncpa [#allocation6], 0 }
   0x2   :  { %10 = vsyncpa [#allocation4], 0  ;;  %s795_s12 = smov [#allocation2]  }
   0x3   :  { %s18_s13 = sshll.u32 %s795_s12, 4  ;;  %s19_s13 = int_to_ptr.vmem [resolvable:$true] %s18_s13 }
   0x4   :  { %s737_s14 = scalar_lea.vmem %s19_s13, 2048  ;;  %p742_p1 = scmp.lt.s32.totalorder %s19_s13, %s19_s13 }
   0x5   :  { %p738_p0 = scmp.ne.s32.totalorder %s19_s13, %s737_s14  ;;  %p743_p2 = scmp.lt.s32.totalorder %s737_s14, %s737_s14 }
   0x7   :  { %p744_p3 = por %p743_p2, %p742_p1 }
   0x9   :  { %p745_p4 = pnand %p744_p3, %p738_p0 }
   0xb   :  { %748 = shalt.err (!%p745_p4)
}
   0xc   :  { %s796_s15 = smov 512   ;;  %s797_s16 = smov 32  }
   0xd   :  { %24 = dma.hbm_to_vmem [thread:$0]  %s970_s1, 2048, %s19_s13, [#allocation3], %s796_s15, %s796_s15, %s797_s16  }
   0xe   :  { %s798_s19 = smov [#allocation5]  }
   0xf   :  { %s31_s20 = sshll.u32 %s798_s19, 4  ;;  %s32_s20 = int_to_ptr.vmem [resolvable:$true] %s31_s20 }
  0x10   :  { %s757_s21 = scalar_lea.vmem %s32_s20, 512  ;;  %p762_p6 = scmp.lt.s32.totalorder %s32_s20, %s32_s20 }
  0x11   :  { %p758_p5 = scmp.ne.s32.totalorder %s32_s20, %s757_s21  ;;  %p763_p7 = scmp.lt.s32.totalorder %s757_s21, %s757_s21 }
  0x13   :  { %p764_p8 = por %p763_p7, %p762_p6 }
  0x15   :  { %p765_p9 = pnand %p764_p8, %p758_p5 }
  0x17   :  { %768 = shalt.err (!%p765_p9)
}
  0x18   :  { %34 = dma.hbm_to_vmem [thread:$0]  %s971_s2, 512, %s32_s20, [#allocation6]  }
  0x19   :  { %789 = dma.done.wait [#allocation3], 2048  }
  0x1a   :  { %790 = vsyncadd [#allocation3], 4294965248 }
  0x1b   :  { %791 = dma.done.wait [#allocation6], 512  }
  0x1c   :  { %792 = vsyncadd [#allocation6], 4294966784  ;;  %v799_v0 = vmov 0   ;;  %v51_v1 = vld [vmem:[#allocation2 + $0x40] sm:$0xff]  ;;  %v52_v3 = vld [vmem:[#allocation2 + $0x48] sm:$0xff]  ;;  %vm181_vm0 = vcmask 261120   ;;  %v61_v34 = vlaneseq }
  0x1d   :  { %217 = vmatprep.mubr.bf16.mxu0 %v799_v0  ;;  %258 = vmatprep.mubr.bf16.mxu1 %v799_v0  ;;  %v55_v2 = vld [vmem:[#allocation2 + $0x60] sm:$0xff]  ;;  %v56_v5 = vld [vmem:[#allocation2 + $0x68] sm:$0xff]  ;;  %v53_v15 = vld [vmem:[#allocation2 + $0x50] sm:$0xff] }
  0x1e   :  { %v695_v4 = vcombine.high %v51_v1, %v55_v2  ;;  %v694_v6 = vcombine.low %v51_v1, %v55_v2  ;;  %v43_v7 = vld [vmem:[#allocation2] sm:$0xff]  ;;  %v697_v9 = vcombine.high %v52_v3, %v56_v5  ;;  %v696_v10 = vcombine.low %v52_v3, %v56_v5  ;;  %v44_v12 = vld [vmem:[#allocation2 + $0x8] sm:$0xff]  ;;  %v57_v16 = vld [vmem:[#allocation2 + $0x70] sm:$0xff] }
  0x1f   :  { %v47_v8 = vld [vmem:[#allocation2 + $0x20] sm:$0xff]  ;;  %v48_v13 = vld [vmem:[#allocation2 + $0x28] sm:$0xff]  ;;  %v54_v17 = vld [vmem:[#allocation2 + $0x58] sm:$0xff]  ;;  %v699_v21 = vcombine.high %v53_v15, %v57_v16  ;;  %v698_v28 = vcombine.low %v53_v15, %v57_v16  ;;  %v835_v35 = vshrl.u32 %v61_v34, 7 }
  0x20   :  { %v687_v11 = vcombine.high %v43_v7, %v47_v8  ;;  %197 = vmatprep.subr.bf16.mxu0 %v695_v4  ;;  %v689_v14 = vcombine.high %v44_v12, %v48_v13  ;;  %238 = vmatprep.subr.bf16.mxu1 %v697_v9  ;;  %v686_v18 = vcombine.low %v43_v7, %v47_v8  ;;  %v58_v19 = vld [vmem:[#allocation2 + $0x78] sm:$0xff]  ;;  %v45_v23 = vld [vmem:[#allocation2 + $0x10] sm:$0xff]  ;;  %v42_v27 = vld [vmem:[%s969_s0] sm:$0xf]  ;;  %s801_s0 = smov [#allocation7]  }
  0x21   :  { %198 = vmatpush1.bf16.msra.mxu0 %v694_v6  ;;  %239 = vmatpush1.bf16.msra.mxu1 %v696_v10  ;;  %v688_v20 = vcombine.low %v44_v12, %v48_v13  ;;  %v701_v22 = vcombine.high %v54_v17, %v58_v19  ;;  %v49_v24 = vld [vmem:[#allocation2 + $0x30] sm:$0xff]  ;;  %v46_v25 = vld [vmem:[#allocation2 + $0x18] sm:$0xff]  ;;  %v700_v29 = vcombine.low %v54_v17, %v58_v19  ;;  %v838_v36 = vsub.s32 0, %v835_v35  ;;  %s676_s24 = sshll.u32 %s801_s0, 4  ;;  %s677_s24 = int_to_ptr.vmem [resolvable:$true] %s676_s24 }
  0x22   :  { %199 = vmatprep.subr.bf16.mxu0 %v687_v11  ;;  %240 = vmatprep.subr.bf16.mxu1 %v689_v14  ;;  %v50_v26 = vld [vmem:[#allocation2 + $0x38] sm:$0xff]  ;;  %v691_v30 = vcombine.high %v45_v23, %v49_v24  ;;  %v690_v32 = vcombine.low %v45_v23, %v49_v24  ;;  %v841_v38 = vsub.s32 2, %v835_v35  ;;  %v844_v39 = vsub.s32 1, %v835_v35  ;;  %s769_s25 = scalar_lea.vmem %s677_s24, 1024  ;;  %p774_p11 = scmp.lt.s32.totalorder %s677_s24, %s677_s24 }
  0x23   :  { %v693_v31 = vcombine.high %v46_v25, %v50_v26  ;;  %v692_v33 = vcombine.low %v46_v25, %v50_v26  ;;  %v59_v37 = vld [vmem:[#allocation5] ss:$4 sm:$0xff]  ;;  %v847_v40 = vsub.s32 3, %v835_v35  ;;  %v854_v48 = vsub.s32 4, %v835_v35  ;;  %p770_p10 = scmp.ne.s32.totalorder %s677_s24, %s769_s25  ;;  %p775_p12 = scmp.lt.s32.totalorder %s769_s25, %s769_s25 }
  0x24   :  { %v64_v41 = vrot.slane %v59_v37, %v838_v36  ;;  %v72_v42 = vrot.slane %v59_v37, %v841_v38  ;;  %v68_v43 = vrot.slane %v59_v37, %v844_v39  ;;  %v857_v51 = vsub.s32 6, %v835_v35 }
  0x25   :  { %200 = vmatpush1.bf16.msra.mxu0 %v686_v18  ;;  %241 = vmatpush1.bf16.msra.mxu1 %v688_v20  ;;  %v76_v45 = vrot.slane %v59_v37, %v847_v40  ;;  %v862_v55 = vsub.s32 5, %v835_v35  ;;  %v867_v59 = vsub.s32 7, %v835_v35  ;;  %v80_v63 = vrot.slane %v59_v37, %v854_v48  ;;  %p776_p13 = por %p775_p12, %p774_p11 }
  0x26   :  { %279 = vmatprep.subr.bf16.mxu0 %v699_v21  ;;  %320 = vmatprep.subr.bf16.mxu1 %v701_v22  ;;  %v88_v3 = vrot.slane %v59_v37, %v857_v51 }
  0x27   :  { %v84_v7 = vrot.slane %v59_v37, %v862_v55  ;;  %v92_v11 = vrot.slane %v59_v37, %v867_v59  ;;  %p777_p0 = pnand %p776_p13, %p770_p10 }
  0x28   :  { %702 = vmatmul.mubr.msk.bf16.vlgmr.msra.gmra.mxu0 %vm181_vm0, %v42_v27  ;;  %703 = vmatmul.mubr.msk.bf16.vlgmr.msra.gmra.mxu1 %vm181_vm0, %v42_v27 }
  0x29   :  { %280 = vmatpush1.bf16.msra.mxu0 %v698_v28  ;;  %321 = vmatpush1.bf16.msra.mxu1 %v700_v29 }
  0x2a   :  { %281 = vmatprep.subr.bf16.mxu0 %v691_v30  ;;  %322 = vmatprep.subr.bf16.mxu1 %v693_v31 }
  0x2b   :  { %299 = vmatprep.mubr.bf16.mxu0 %v799_v0  ;;  %340 = vmatprep.mubr.bf16.mxu1 %v799_v0 }
  0x2d   :  { %282 = vmatpush1.bf16.msra.mxu0 %v690_v32  ;;  %323 = vmatpush1.bf16.msra.mxu1 %v692_v33 }
  0x30   :  { %704 = vmatmul.mubr.msk.bf16.vlgmr.msra.gmra.mxu0 %vm181_vm0, %v42_v27  ;;  %705 = vmatmul.mubr.msk.bf16.vlgmr.msra.gmra.mxu1 %vm181_vm0, %v42_v27 }
  0xe8   :  { %v219_v44 = vpop.f32.mrf.mxu0  ;;  %v260_v47 = vpop.f32.mrf.mxu1 }
  0xe9   :  { %v220_v46 = vadd.f32 %v219_v44, %v64_v41  ;;  %v261_v49 = vadd.f32 %v260_v47, %v72_v42 }
  0xea   :  { %v221_v50 = vpop.f32.mrf.mxu0  ;;  %v262_v54 = vpop.f32.mrf.mxu1 }
  0xeb   :  { %v859_v52 = vmax.f32 %v220_v46, 0.0  ;;  %v222_v53 = vadd.f32 %v221_v50, %v68_v43  ;;  %v864_v56 = vmax.f32 %v261_v49, 0.0  ;;  %v263_v57 = vadd.f32 %v262_v54, %v76_v45 }
  0xec   :  { %v223_v58 = vpop.f32.mrf.mxu0  ;;  %v264_v62 = vpop.f32.mrf.mxu1 }
  0xed   :  { %v357_v60 = vrot.slane %v859_v52, 4  ;;  %v870_v61 = vmax.f32 %v222_v53, 0.0  ;;  %v369_v0 = vrot.slane %v864_v56, 4  ;;  %v874_v1 = vmax.f32 %v263_v57, 0.0 }
  0xee   :  { %v224_v2 = vpop.f32.mrf.mxu0  ;;  %v265_v6 = vpop.f32.mrf.mxu1 }
  0xef   :  { %v358_v4 = vadd.f32 %v357_v60, %v859_v52  ;;  %v363_v5 = vrot.slane %v870_v61, 4  ;;  %v370_v8 = vadd.f32 %v369_v0, %v864_v56  ;;  %v375_v9 = vrot.slane %v874_v1, 4 }
  0xf0   :  { %v301_v10 = vpop.f32.mrf.mxu0  ;;  %v342_v15 = vpop.f32.mrf.mxu1 }
  0xf1   :  { %v359_v12 = vrot.slane %v358_v4, 2  ;;  %v364_v13 = vadd.f32 %v363_v5, %v870_v61  ;;  %v302_v14 = vadd.f32 %v301_v10, %v80_v63  ;;  %v371_v16 = vrot.slane %v370_v8, 2 }
  0xf2   :  { %v376_v17 = vadd.f32 %v375_v9, %v874_v1  ;;  %v343_v18 = vadd.f32 %v342_v15, %v88_v3  ;;  %v303_v19 = vpop.f32.mrf.mxu0  ;;  %v344_v24 = vpop.f32.mrf.mxu1 }
  0xf3   :  { %v360_v20 = vadd.f32 %v359_v12, %v358_v4  ;;  %v365_v21 = vrot.slane %v364_v13, 2  ;;  %v885_v22 = vmax.f32 %v302_v14, 0.0  ;;  %v304_v23 = vadd.f32 %v303_v19, %v84_v7 }
  0xf4   :  { %v372_v25 = vadd.f32 %v371_v16, %v370_v8  ;;  %v377_v26 = vrot.slane %v376_v17, 2  ;;  %v887_v27 = vmax.f32 %v343_v18, 0.0  ;;  %v345_v28 = vadd.f32 %v344_v24, %v92_v11  ;;  %v305_v29 = vpop.f32.mrf.mxu0  ;;  %v346_v34 = vpop.f32.mrf.mxu1 }
  0xf5   :  { %v361_v30 = vrot.slane %v360_v20, 1  ;;  %v366_v31 = vadd.f32 %v365_v21, %v364_v13  ;;  %v381_v32 = vrot.slane %v885_v22, 4  ;;  %v890_v33 = vmax.f32 %v304_v23, 0.0 }
  0xf6   :  { %v373_v37 = vrot.slane %v372_v25, 1  ;;  %v378_v41 = vadd.f32 %v377_v26, %v376_v17  ;;  %v393_v42 = vrot.slane %v887_v27, 4  ;;  %v893_v43 = vmax.f32 %v345_v28, 0.0  ;;  %v306_v44 = vpop.f32.mrf.mxu0  ;;  %v347_v50 = vpop.f32.mrf.mxu1 }
  0xf7   :  { %v362_v45 = vadd.f32 %v361_v30, %v360_v20  ;;  %v367_v46 = vrot.slane %v366_v31, 1  ;;  %v382_v47 = vadd.f32 %v381_v32, %v885_v22  ;;  %v387_v49 = vrot.slane %v890_v33, 4 }
  0xf8   :  { %v374_v53 = vadd.f32 %v373_v37, %v372_v25  ;;  %v379_v54 = vrot.slane %v378_v41, 1  ;;  %v394_v57 = vadd.f32 %v393_v42, %v887_v27  ;;  %v399_v58 = vrot.slane %v893_v43, 4 }
  0xf9   :  { %v405_v60 = vmul.f32 0.125, %v362_v45  ;;  %v368_v62 = vadd.f32 %v367_v46, %v366_v31  ;;  %v383_v63 = vrot.slane %v382_v47, 2  ;;  %v388_v0 = vadd.f32 %v387_v49, %v890_v33 }
  0xfa   :  { %v407_v2 = vmul.f32 0.125, %v374_v53  ;;  %v380_v3 = vadd.f32 %v379_v54, %v378_v41  ;;  %v395_v4 = vrot.slane %v394_v57, 2  ;;  %v400_v5 = vadd.f32 %v399_v58, %v893_v43 }
  0xfb   :  { %v902_v6 = vsub.f32 %v859_v52, %v405_v60  ;;  %v406_v7 = vmul.f32 0.125, %v368_v62  ;;  %v384_v8 = vadd.f32 %v383_v63, %v382_v47  ;;  %v389_v9 = vrot.slane %v388_v0, 2 }
  0xfc   :  { %v905_v10 = vsub.f32 %v864_v56, %v407_v2  ;;  %v408_v11 = vmul.f32 0.125, %v380_v3  ;;  %v396_v12 = vadd.f32 %v395_v4, %v394_v57  ;;  %v401_v13 = vrot.slane %v400_v5, 2 }
  0xfd   :  { %v421_v14 = vmul.f32 %v902_v6, %v902_v6  ;;  %v910_v15 = vsub.f32 %v870_v61, %v406_v7  ;;  %v385_v16 = vrot.slane %v384_v8, 1  ;;  %v390_v17 = vadd.f32 %v389_v9, %v388_v0 }
  0xfe   :  { %v423_v52 = vmul.f32 %v905_v10, %v905_v10  ;;  %v915_v18 = vsub.f32 %v874_v1, %v408_v11  ;;  %v397_v19 = vrot.slane %v396_v12, 1  ;;  %v402_v56 = vadd.f32 %v401_v13, %v400_v5 }
  0xff   :  { %v429_v20 = vrot.slane %v421_v14, 4  ;;  %v422_v21 = vmul.f32 %v910_v15, %v910_v15  ;;  %v386_v23 = vadd.f32 %v385_v16, %v384_v8  ;;  %v391_v24 = vrot.slane %v390_v17, 1 }
 0x100   :  { %v441_v25 = vrot.slane %v423_v52, 4  ;;  %v424_v61 = vmul.f32 %v915_v18, %v915_v18  ;;  %v398_v26 = vadd.f32 %v397_v19, %v396_v12  ;;  %v403_v28 = vrot.slane %v402_v56, 1 }
 0x101   :  { %v430_v29 = vadd.f32 %v429_v20, %v421_v14  ;;  %v435_v30 = vrot.slane %v422_v21, 4  ;;  %v409_v31 = vmul.f32 0.125, %v386_v23  ;;  %v392_v32 = vadd.f32 %v391_v24, %v390_v17 }
 0x102   :  { %v442_v1 = vadd.f32 %v441_v25, %v423_v52  ;;  %v447_v34 = vrot.slane %v424_v61, 4  ;;  %v411_v37 = vmul.f32 0.125, %v398_v26  ;;  %v404_v41 = vadd.f32 %v403_v28, %v402_v56 }
 0x103   :  { %v431_v42 = vrot.slane %v430_v29, 2  ;;  %v436_v44 = vadd.f32 %v435_v30, %v422_v21  ;;  %v922_v45 = vsub.f32 %v885_v22, %v409_v31  ;;  %v410_v46 = vmul.f32 0.125, %v392_v32 }
 0x104   :  { %v443_v47 = vrot.slane %v442_v1, 2  ;;  %v448_v49 = vadd.f32 %v447_v34, %v424_v61  ;;  %v925_v50 = vsub.f32 %v887_v27, %v411_v37  ;;  %v412_v53 = vmul.f32 0.125, %v404_v41 }
 0x105   :  { %v432_v54 = vadd.f32 %v431_v42, %v430_v29  ;;  %v437_v57 = vrot.slane %v436_v44, 2  ;;  %v425_v58 = vmul.f32 %v922_v45, %v922_v45  ;;  %v930_v60 = vsub.f32 %v890_v33, %v410_v46 }
 0x106   :  { %v444_v62 = vadd.f32 %v443_v47, %v442_v1  ;;  %v449_v63 = vrot.slane %v448_v49, 2  ;;  %v427_v22 = vmul.f32 %v925_v50, %v925_v50  ;;  %v935_v0 = vsub.f32 %v893_v43, %v412_v53 }
 0x107   :  { %v433_v2 = vrot.slane %v432_v54, 1  ;;  %v438_v27 = vadd.f32 %v437_v57, %v436_v44  ;;  %v453_v3 = vrot.slane %v425_v58, 4  ;;  %v426_v4 = vmul.f32 %v930_v60, %v930_v60 }
 0x108   :  { %v445_v5 = vrot.slane %v444_v62, 1  ;;  %v450_v7 = vadd.f32 %v449_v63, %v448_v49  ;;  %v465_v8 = vrot.slane %v427_v22, 4  ;;  %v428_v33 = vmul.f32 %v935_v0, %v935_v0 }
 0x109   :  { %v434_v9 = vadd.f32 %v433_v2, %v432_v54  ;;  %v439_v11 = vrot.slane %v438_v27, 1  ;;  %v454_v12 = vadd.f32 %v453_v3, %v425_v58  ;;  %v459_v13 = vrot.slane %v426_v4, 4 }
 0x10a   :  { %v446_v14 = vadd.f32 %v445_v5, %v444_v62  ;;  %v451_v16 = vrot.slane %v450_v7, 1  ;;  %v466_v43 = vadd.f32 %v465_v8, %v427_v22  ;;  %v471_v17 = vrot.slane %v428_v33, 4 }
 0x10b   :  { %v477_v52 = vmul.f32 0.125, %v434_v9  ;;  %v440_v19 = vadd.f32 %v439_v11, %v438_v27  ;;  %v455_v56 = vrot.slane %v454_v12, 2  ;;  %v460_v20 = vadd.f32 %v459_v13, %v426_v4 }
 0x10c   :  { %v479_v21 = vmul.f32 0.125, %v446_v14  ;;  %v452_v23 = vadd.f32 %v451_v16, %v450_v7  ;;  %v467_v24 = vrot.slane %v466_v43, 2  ;;  %v472_v25 = vadd.f32 %v471_v17, %v428_v33 }
 0x10d   :  { %v478_v61 = vmul.f32 0.125, %v440_v19  ;;  %v456_v26 = vadd.f32 %v455_v56, %v454_v12  ;;  %v461_v28 = vrot.slane %v460_v20, 2  ;;  %v487_v32 = vadd.f32 1e-05, %v477_v52 }
 0x10e   :  { %v480_v29 = vmul.f32 0.125, %v452_v23  ;;  %v468_v30 = vadd.f32 %v467_v24, %v466_v43  ;;  %v473_v31 = vrot.slane %v472_v25, 2  ;;  %v489_v41 = vadd.f32 1e-05, %v479_v21 }
 0x10f   :  { %v488_v1 = vadd.f32 1e-05, %v478_v61  ;;  %v457_v34 = vrot.slane %v456_v26, 1  ;;  %v462_v37 = vadd.f32 %v461_v28, %v460_v20  ;;  %v800_v7 = vmov 1966171168  }
 0x110   :  { %v490_v42 = vadd.f32 1e-05, %v480_v29  ;;  %v469_v44 = vrot.slane %v468_v30, 1  ;;  %v474_v46 = vadd.f32 %v473_v31, %v472_v25  ;;  %v516_v8 = vunpack.c.l.s4 %v800_v7  ;;  %v612_v29 = vld [vmem:[#allocation5 + $0x2] ss:$4 sm:$0xff] }
 0x111   :  { %713 = vrsqrt.f32 %v488_v1  ;;  %v458_v47 = vadd.f32 %v457_v34, %v456_v26  ;;  %v463_v49 = vrot.slane %v462_v37, 1  ;;  %v625_v34 = vrot.slane %v612_v29, %v841_v38 }
 0x112   :  { %715 = vrsqrt.f32 %v490_v42  ;;  %v470_v53 = vadd.f32 %v469_v44, %v468_v30  ;;  %v475_v54 = vrot.slane %v474_v46, 1  ;;  %v517_v9 = vunpack.c.0.s8 %v516_v8 }
 0x113   :  { %717 = vrsqrt.f32 %v487_v32  ;;  %v481_v57 = vmul.f32 0.125, %v458_v47  ;;  %v464_v58 = vadd.f32 %v463_v49, %v462_v37  ;;  %v486_v32 = vld [vmem:[#allocation5 + $0x1] ss:$4 sm:$0xff]  ;;  %v621_v37 = vrot.slane %v612_v29, %v844_v39 }
 0x114   :  { %719 = vrsqrt.f32 %v489_v41  ;;  %v483_v62 = vmul.f32 0.125, %v470_v53  ;;  %v476_v63 = vadd.f32 %v475_v54, %v474_v46  ;;  %v520_v16 = vsub.s32 %v517_v9, %v835_v35 }
 0x115   :  { %v491_v22 = vadd.f32 1e-05, %v481_v57  ;;  %v482_v2 = vmul.f32 0.125, %v464_v58  ;;  %v617_v35 = vrot.slane %v612_v29, %v838_v36  ;;  %v629_v41 = vrot.slane %v612_v29, %v847_v40 }
 0x116   :  { %v493_v27 = vadd.f32 1e-05, %v483_v62  ;;  %v484_v3 = vmul.f32 0.125, %v476_v63  ;;  %v633_v44 = vrot.slane %v612_v29, %v854_v48  ;;  %v641_v46 = vrot.slane %v612_v29, %v857_v51 }
 0x117   :  { %721 = vrsqrt.f32 %v491_v22  ;;  %v492_v4 = vadd.f32 1e-05, %v482_v2  ;;  %v637_v47 = vrot.slane %v612_v29, %v862_v55  ;;  %v645_v49 = vrot.slane %v612_v29, %v867_v59 }
 0x118   :  { %723 = vrsqrt.f32 %v493_v27  ;;  %v494_v5 = vadd.f32 1e-05, %v484_v3 }
 0x119   :  { %725 = vrsqrt.f32 %v492_v4 }
 0x11a   :  { %727 = vrsqrt.f32 %v494_v5 }
 0x11e   :  { %v714_v33 = vpop.eup %713 }
 0x11f   :  { %v716_v11 = vpop.eup %715 }
 0x120   :  { %v718_v12 = vpop.eup %717 }
 0x121   :  { %v720_v13 = vpop.eup %719  ;;  %v511_v14 = vcombine.low %v718_v12, %v714_v33 }
 0x122   :  { %v512_v43 = vcombine.low %v720_v13, %v716_v11 }
 0x123   :  { %v521_v56 = vrot.slane %v511_v14, %v520_v16 }
 0x124   :  { %v722_v17 = vpop.eup %721  ;;  %v528_v20 = vrot.slane %v512_v43, %v520_v16 }
 0x125   :  { %v724_v52 = vpop.eup %723 }
 0x126   :  { %v726_v19 = vpop.eup %725  ;;  %v543_v61 = vcombine.low %v521_v56, %v528_v20 }
 0x127   :  { %v728_v21 = vpop.eup %727  ;;  %v513_v23 = vcombine.low %v722_v17, %v726_v19 }
 0x128   :  { %v514_v24 = vcombine.low %v724_v52, %v728_v21  ;;  %v551_v30 = vrot.slane %v543_v61, %v520_v16 }
 0x129   :  { %v535_v25 = vrot.slane %v513_v23, %v520_v16 }
 0x12a   :  { %v542_v26 = vrot.slane %v514_v24, %v520_v16 }
 0x12c   :  { %v544_v28 = vcombine.low %v535_v25, %v542_v26 }
 0x12e   :  { %v558_v31 = vrot.slane %v544_v28, %v520_v16 }
 0x130   :  { %v559_v1 = vcombine.low %v551_v30, %v558_v31 }
 0x132   :  { %v561_v42 = vmul.f32 %v559_v1, %v486_v32 }
 0x134   :  { %v594_v53 = vrot.slane %v561_v42, %v867_v59  ;;  %v566_v54 = vrot.slane %v561_v42, %v838_v36  ;;  %v570_v57 = vrot.slane %v561_v42, %v844_v39  ;;  %v574_v58 = vrot.slane %v561_v42, %v841_v38 }
 0x135   :  { %v578_v62 = vrot.slane %v561_v42, %v847_v40  ;;  %v582_v63 = vrot.slane %v561_v42, %v854_v48  ;;  %v586_v22 = vrot.slane %v561_v42, %v862_v55  ;;  %v590_v2 = vrot.slane %v561_v42, %v857_v51 }
 0x136   :  { %v610_v27 = vmul.f32 %v594_v53, %v935_v0  ;;  %v603_v3 = vmul.f32 %v566_v54, %v902_v6  ;;  %v604_v59 = vmul.f32 %v570_v57, %v910_v15  ;;  %v605_v36 = vmul.f32 %v574_v58, %v905_v10 }
 0x137   :  { %v606_v38 = vmul.f32 %v578_v62, %v915_v18  ;;  %v607_v39 = vmul.f32 %v582_v63, %v922_v45  ;;  %v608_v40 = vmul.f32 %v586_v22, %v930_v60  ;;  %v609_v48 = vmul.f32 %v590_v2, %v925_v50 }
 0x138   :  { %v661_v55 = vadd.f32 %v645_v49, %v610_v27  ;;  %v654_v51 = vadd.f32 %v617_v35, %v603_v3  ;;  %v655_v4 = vadd.f32 %v621_v37, %v604_v59  ;;  %v656_v0 = vadd.f32 %v625_v34, %v605_v36 }
 0x139   :  { %v657_v5 = vadd.f32 %v629_v41, %v606_v38  ;;  %v658_v6 = vadd.f32 %v633_v44, %v607_v39  ;;  %v659_v7 = vadd.f32 %v637_v47, %v608_v40  ;;  %v660_v15 = vadd.f32 %v641_v46, %v609_v48 }
 0x13a   :  { %669 = vst [vmem:[#allocation7 + $0x38] sm:$0xff] %v661_v55  ;;  %662 = vst [vmem:[#allocation7] sm:$0xff] %v654_v51 }
 0x13b   :  { %663 = vst [vmem:[#allocation7 + $0x8] sm:$0xff] %v655_v4  ;;  %664 = vst [vmem:[#allocation7 + $0x10] sm:$0xff] %v656_v0 }
 0x13c   :  { %665 = vst [vmem:[#allocation7 + $0x18] sm:$0xff] %v657_v5  ;;  %666 = vst [vmem:[#allocation7 + $0x20] sm:$0xff] %v658_v6 }
 0x13d   :  { %667 = vst [vmem:[#allocation7 + $0x28] sm:$0xff] %v659_v7  ;;  %668 = vst [vmem:[#allocation7 + $0x30] sm:$0xff] %v660_v15 }
 0x13e   :  { %780 = shalt.err (!%p777_p0)
}
 0x13f   :  { %679 = dma.vmem_to_hbm [thread:$0]  %s677_s24, 1024, %s972_s3, [#allocation4]  }
 0x140   :  { %793 = dma.done.wait [#allocation4], 1024  }
 0x141   :  { %794 = vsyncadd [#allocation4], 4294966272 }
 0x142   :  { %683 = vsyncpa [#allocation3], 1 }
 0x143   :  { %684 = vsyncpa [#allocation6], 1 }
 0x144   :  { %685 = vsyncpa [#allocation4], 1 }

</bundles_post_ra>
